<compile_context>
chip_gen: v7x
topology: tpu7x:2x2x1
jax: 0.10.0
libtpu: 0.0.40
codegen_flags: <defaults>
</compile_context>

<pallas_src>
import functools

import jax
import jax.numpy as jnp
from jax.experimental import pallas as pl
from jax.experimental.pallas import tpu as pltpu

ACT_DTYPE = jnp.bfloat16  # inter-kernel activation storage dtype


def _round_up(x, m):
    return (x + m - 1) // m * m


# ----------------------------------------------------------------------------
# Pallas kernels
# ----------------------------------------------------------------------------
def _mm_kernel(x_ref, w_ref, b_ref, o_ref, *, apply_relu):
    """(tm, K) @ (K, tn) + bias, optional ReLU.  bf16 operands, f32 epilogue."""
    y = jnp.dot(x_ref[...], w_ref[...], preferred_element_type=jnp.float32)
    y = y + b_ref[...]
    if apply_relu:
        y = jnp.maximum(y, 0.0)
    o_ref[...] = y.astype(o_ref.dtype)


def _mm_res_kernel(x_ref, w_ref, b_ref, r_ref, o_ref, *, apply_relu):
    """Same as _mm_kernel plus a fused residual add (f32 epilogue)."""
    y = jnp.dot(x_ref[...], w_ref[...], preferred_element_type=jnp.float32)
    y = y + b_ref[...] + r_ref[...].astype(jnp.float32)
    if apply_relu:
        y = jnp.maximum(y, 0.0)
    o_ref[...] = y.astype(o_ref.dtype)


def _conv_kernel(x_ref, w_ref, b_ref, o_ref, acc_ref, *,
                 kh, kw, stride, wq, apply_relu):
    """KxK conv for one image / one Cout tile.

    x_ref: (1, s*s, Hq*Wq, Cin)  flattened row/col-parity phases of the padded
                                 image (one image).
    w_ref: (kh*kw, Cin, tn)      BN-scale-folded weights (bf16).
    b_ref: (1, tn)               folded BN bias (f32).
    o_ref: (1, Ho, Wo, tn)
    acc_ref: (Ho*Wq, tn) f32     VMEM accumulator (whole-image per-tap matmuls;
                                 columns w in [Wo, Wq) are garbage, never stored).
    """
    _, Ho, Wo, tn = o_ref.shape
    s = stride
    mslab = acc_ref.shape[0]          # Ho * Wq

    # Taps outer (fully unrolled, RHS-stationary per tap); one big matmul each.
    first = True
    for dh in range(kh):
        for dw in range(kw):
            ph = (dh % s) * s + (dw % s)
            start = (dh // s) * wq + (dw // s)
            lhs = x_ref[0, ph, pl.ds(start, mslab), :]
            contrib = jnp.dot(lhs, w_ref[dh * kw + dw],
                              preferred_element_type=jnp.float32)
            if first:
                acc_ref[...] = contrib
                first = False
            else:
                acc_ref[...] += contrib

    bias = b_ref[...]
    # Static epilogue row loop: pick the Wo valid columns out of each Wq-row.
    for r in range(Ho):
        y = acc_ref[pl.ds(r * wq, Wo), :] + bias
        if apply_relu:
            y = jnp.maximum(y, 0.0)
        o_ref[0, r, :, :] = y.astype(o_ref.dtype)


def _maxpool_kernel(x_ref, o_ref, acc_ref, *, wq):
    """3x3 / stride-2 max pool for one image (running max kept in bf16).

    x_ref: (1, 4, Hq*Wq, C)  flattened 2-D phases of the zero-padded image
                             (zero pad is exact here: inputs are post-ReLU).
    o_ref: (1, Ho, Wo, C)
    acc_ref: (Ho*Wq, C) bf16 scratch.
    """
    _, Ho, Wo, C = o_ref.shape
    mslab = acc_ref.shape[0]
    first = True
    for dh in range(3):
        for dw in range(3):
            ph = (dh % 2) * 2 + (dw % 2)
            start = (dh // 2) * wq + (dw // 2)
            v = x_ref[0, ph, pl.ds(start, mslab), :]
            if first:
                acc_ref[...] = v
                first = False
            else:
                acc_ref[...] = jnp.maximum(acc_ref[...], v)
    for r in range(Ho):
        o_ref[0, r, :, :] = acc_ref[pl.ds(r * wq, Wo), :]


def _avgpool_kernel(x_ref, o_ref):
    # x_ref: (1, H*W, C) -> o_ref: (1, C); C=2048 stays lane-dense.
    o_ref[...] = jnp.mean(x_ref[...].astype(jnp.float32), axis=1)


# ----------------------------------------------------------------------------
# Pallas wrappers
# ----------------------------------------------------------------------------
def matmul_bias(x, w, bias, residual=None, apply_relu=True):
    """relu?( x @ w + bias (+ residual) ) with full-K blocks (no K grid axis).

    x: (M, K) bf16, w: (K, N) bf16 (BN scale pre-folded), bias: (1, N) f32.
    """
    M, K = x.shape
    N = w.shape[1]
    tm = min(512, _round_up(M, 8))
    Mp = _round_up(M, tm)
    # Tiny-M layers are weight-DMA bound: take the whole N in one block when
    # the weight block stays small; otherwise tile N at 512.
    if Mp // tm == 1 and K * N * 2 <= (8 << 20):
        tn = N
    else:
        tn = min(512, N)

    if Mp != M:
        x = jnp.pad(x, ((0, Mp - M), (0, 0)))
        if residual is not None:
            residual = jnp.pad(residual, ((0, Mp - M), (0, 0)))

    in_specs = [
        pl.BlockSpec((tm, K), lambda i, j: (i, 0)),
        pl.BlockSpec((K, tn), lambda i, j: (0, j)),
        pl.BlockSpec((1, tn), lambda i, j: (0, j)),
    ]
    args = [x, w, bias]
    if residual is not None:
        in_specs.append(pl.BlockSpec((tm, tn), lambda i, j: (i, j)))
        args.append(residual)
        kernel = functools.partial(_mm_res_kernel, apply_relu=apply_relu)
    else:
        kernel = functools.partial(_mm_kernel, apply_relu=apply_relu)

    flops = 2 * Mp * K * N
    bytes_accessed = (Mp * K + K * N + Mp * N) * 2 + N * 4
    if residual is not None:
        bytes_accessed += Mp * N * 2

    out = pl.pallas_call(
        kernel,
        out_shape=jax.ShapeDtypeStruct((Mp, N), ACT_DTYPE),
        grid_spec=pltpu.PrefetchScalarGridSpec(
            num_scalar_prefetch=0,
            grid=(Mp // tm, N // tn),
            in_specs=in_specs,
            out_specs=pl.BlockSpec((tm, tn), lambda i, j: (i, j)),
        ),
        cost_estimate=pl.CostEstimate(flops=flops, transcendentals=0,
                                      bytes_accessed=bytes_accessed),
        compiler_params=pltpu.CompilerParams(
            dimension_semantics=("parallel", "parallel")),
    )(*args)
    return out if Mp == M else out[:M]


def conv1x1_bn(x, w, bias, stride=1, apply_relu=True, residual=None):
    """Pointwise conv + folded BN (+residual) (+ReLU).  x: (B,H,W,Cin) bf16."""
    if stride > 1:
        # TODO(synk): fold this strided slice into the matmul BlockSpec.
        x = x[:, ::stride, ::stride, :]
    B, H, W, Cin = x.shape
    Cout = w.shape[1]
    xm = x.reshape(B * H * W, Cin)
    rm = None if residual is None else residual.reshape(B * H * W, Cout)
    out = matmul_bias(xm, w, bias, residual=rm, apply_relu=apply_relu)
    return out.reshape(B, H, W, Cout)


def _pad_and_phase_split(x, stride, padding):
    """Zero-pad and 2-D phase-split (row/col parity), flattened spatially.

    Returns (xph, Hq, Wq) with xph: (B, stride*stride, Hq*Wq, C).  One extra
    phase row is added at the bottom so per-tap whole-image slabs stay
    in-bounds inside the kernel (the extra data only feeds discarded columns).
    """
    B, H, W, C = x.shape
    s = stride
    Hp0, Wp0 = H + 2 * padding, W + 2 * padding
    Wq = -(-Wp0 // s)
    Hq = -(-Hp0 // s) + 1
    Hp, Wp = Hq * s, Wq * s
    xp = jnp.pad(x, ((0, 0), (padding, Hp - H - padding),
                     (padding, Wp - W - padding), (0, 0)))
    if s == 1:
        return xp.reshape(B, 1, Hp * Wp, C), Hq, Wq
    xr = xp.reshape(B, Hq, s, Wq, s, C)
    xr = jnp.transpose(xr, (0, 2, 4, 1, 3, 5))       # (B, s, s, Hq, Wq, C)
    return xr.reshape(B, s * s, Hq * Wq, C), Hq, Wq


def conv_kk_bn(x, w, bias, *, kh, kw, stride, padding, apply_relu=True):
    """KxK conv + folded BN (+ReLU) with per-tap whole-image MXU matmuls.

    x: (B,H,W,Cin) bf16; w: (kh*kw, Cin, Cout) bf16; bias: (1, Cout) f32.
    """
    B, H, W, Cin = x.shape
    Cout = w.shape[2]
    Ho = (H + 2 * padding - kh) // stride + 1
    Wo = (W + 2 * padding - kw) // stride + 1

    xph, Hq, Wq = _pad_and_phase_split(x, stride, padding)
    mslab = Ho * Wq
    tn = min(256, Cout)

    kernel = functools.partial(_conv_kernel, kh=kh, kw=kw, stride=stride,
                               wq=Wq, apply_relu=apply_relu)
    flops = 2 * B * mslab * Cin * Cout * kh * kw
    bytes_accessed = (B * xph.shape[1] * xph.shape[2] * Cin
                      + kh * kw * Cin * Cout + B * Ho * Wo * Cout) * 2 + Cout * 4

    return pl.pallas_call(
        kernel,
        out_shape=jax.ShapeDtypeStruct((B, Ho, Wo, Cout), ACT_DTYPE),
        grid_spec=pltpu.PrefetchScalarGridSpec(
            num_scalar_prefetch=0,
            grid=(B, Cout // tn),
            in_specs=[
                pl.BlockSpec((1, stride * stride, Hq * Wq, Cin),
                             lambda b, n: (b, 0, 0, 0)),
                pl.BlockSpec((kh * kw, Cin, tn), lambda b, n: (0, 0, n)),
                pl.BlockSpec((1, tn), lambda b, n: (0, n)),
            ],
            out_specs=pl.BlockSpec((1, Ho, Wo, tn), lambda b, n: (b, 0, 0, n)),
            scratch_shapes=[pltpu.VMEM((mslab, tn), jnp.float32)],
        ),
        cost_estimate=pl.CostEstimate(flops=flops, transcendentals=0,
                                      bytes_accessed=bytes_accessed),
        compiler_params=pltpu.CompilerParams(
            dimension_semantics=("parallel", "parallel")),
    )(xph, w, bias)


def conv1_7x7(x, w, bias):
    """conv1 (7x7, s2, p3) + folded BN + ReLU via wrapper im2col (K=160).

    x: (B,H,W,3) bf16; w: (160, 128) bf16 (rows 147..159 and cols 64..127 are
    zero pads); bias: (1, 128) f32.
    """
    B, H, W, _ = x.shape
    k, s, p = 7, 2, 3
    Ho = (H + 2 * p - k) // s + 1
    Wo = (W + 2 * p - k) // s + 1
    xp = jnp.pad(x, ((0, 0), (p, p), (p, p), (0, 0)))
    taps = [xp[:, dh:dh + s * Ho:s, dw:dw + s * Wo:s, :]
            for dh in range(k) for dw in range(k)]
    patches = jnp.concatenate(taps, axis=-1)                 # (B, Ho, Wo, 147)
    Kp = w.shape[0]
    patches = jnp.pad(patches, ((0, 0), (0, 0), (0, 0),
                                (0, Kp - patches.shape[-1])))
    out = matmul_bias(patches.reshape(B * Ho * Wo, Kp), w, bias,
                      apply_relu=True)
    return out.reshape(B, Ho, Wo, w.shape[1])


def maxpool_3x3_s2(x):
    """3x3 max pool, stride 2, pad 1 (NHWC).  Zero padding is exact because
    the input is post-ReLU (>= 0)."""
    B, H, W, C = x.shape
    Ho = (H + 2 - 3) // 2 + 1
    Wo = (W + 2 - 3) // 2 + 1
    xph, Hq, Wq = _pad_and_phase_split(x, stride=2, padding=1)
    mslab = Ho * Wq
    return pl.pallas_call(
        functools.partial(_maxpool_kernel, wq=Wq),
        out_shape=jax.ShapeDtypeStruct((B, Ho, Wo, C), ACT_DTYPE),
        grid_spec=pltpu.PrefetchScalarGridSpec(
            num_scalar_prefetch=0,
            grid=(B,),
            in_specs=[pl.BlockSpec((1, 4, Hq * Wq, C),
                                   lambda b: (b, 0, 0, 0))],
            out_specs=pl.BlockSpec((1, Ho, Wo, C), lambda b: (b, 0, 0, 0)),
            scratch_shapes=[pltpu.VMEM((mslab, C), ACT_DTYPE)],
        ),
        compiler_params=pltpu.CompilerParams(
            dimension_semantics=("parallel",)),
    )(xph)


def global_avg_pool(x):
    """AdaptiveAvgPool2d(1): (B,H,W,C) -> (B,C), tiled over batch, lane-dense C."""
    B, H, W, C = x.shape
    xf = x.reshape(B, H * W, C)
    return pl.pallas_call(
        _avgpool_kernel,
        out_shape=jax.ShapeDtypeStruct((B, C), jnp.float32),
        grid_spec=pltpu.PrefetchScalarGridSpec(
            num_scalar_prefetch=0,
            grid=(B,),
            in_specs=[pl.BlockSpec((1, H * W, C), lambda b: (b, 0, 0))],
            out_specs=pl.BlockSpec((1, C), lambda b: (b, 0)),
        ),
        compiler_params=pltpu.CompilerParams(
            dimension_semantics=("parallel",)),
    )(xf)


# ----------------------------------------------------------------------------
# Deterministic ResNet-50 parameters (same logical shapes as torchvision
# resnet50), BN folded at init (eval mode), lane-dense channel padding:
#   conv1 out 64 -> 128, layer1 mid 64 -> 128 (zero weight/bias pads).
# ----------------------------------------------------------------------------
def _init_conv(key, kh, kw, cin, cout):
    fan_in = kh * kw * cin
    return (jax.random.normal(key, (kh, kw, cin, cout), jnp.float32)
            / jnp.sqrt(jnp.float32(fan_in)))


def _init_bn(key, c, eps=1e-5):
    k1, k2, k3 = jax.random.split(key, 3)
    gamma = 1.0 + 0.1 * jax.random.normal(k1, (c,), jnp.float32)
    beta = 0.1 * jax.random.normal(k2, (c,), jnp.float32)
    mean = 0.1 * jax.random.normal(k3, (c,), jnp.float32)
    var = jnp.ones((c,), jnp.float32)
    scale = gamma / jnp.sqrt(var + eps)       # fold eval-mode BN
    shift = beta - mean * scale
    return scale, shift


def _fold_conv_bn(key_w, key_bn, kh, kw, cin, cout, cin_p=None, cout_p=None):
    """Fold BN scale into the conv weight; zero-pad to lane-dense channel counts."""
    cin_p = cin if cin_p is None else cin_p
    cout_p = cout if cout_p is None else cout_p
    w = _init_conv(key_w, kh, kw, cin, cout)
    scale, shift = _init_bn(key_bn, cout)
    wf = w * scale[None, None, None, :]
    bias = jnp.pad(shift, (0, cout_p - cout)).reshape(1, cout_p).astype(jnp.float32)
    if kh == 1 and kw == 1:
        wf = wf.reshape(cin, cout)
        wf = jnp.pad(wf, ((0, cin_p - cin), (0, cout_p - cout)))
    else:
        wf = wf.reshape(kh * kw, cin, cout)
        wf = jnp.pad(wf, ((0, 0), (0, cin_p - cin), (0, cout_p - cout)))
    return wf.astype(jnp.bfloat16), bias


def _fold_conv1(key_w, key_bn, k_pad=160, cout_p=128):
    """conv1 weight in im2col layout: (7*7*3 -> k_pad, 64 -> cout_p)."""
    w = _init_conv(key_w, 7, 7, 3, 64)
    scale, shift = _init_bn(key_bn, 64)
    wf = (w * scale[None, None, None, :]).reshape(7 * 7 * 3, 64)
    wf = jnp.pad(wf, ((0, k_pad - 7 * 7 * 3), (0, cout_p - 64)))
    bias = jnp.pad(shift, (0, cout_p - 64)).reshape(1, cout_p).astype(jnp.float32)
    return wf.astype(jnp.bfloat16), bias


def init_resnet50_params(key):
    keys = iter(jax.random.split(key, 256))
    nk = lambda: next(keys)
    params = {}
    params["conv1_w"], params["conv1_b"] = _fold_conv1(nk(), nk())
    layers = []
    in_a, in_p = 64, 128                      # actual / stored channel counts
    for mid, nblocks, stride in [(64, 3, 1), (128, 4, 2), (256, 6, 2),
                                 (512, 3, 2)]:
        mid_p = max(mid, 128)                 # lane-dense: pad 64 -> 128
        out_c = mid * 4
        blocks = []
        for b in range(nblocks):
            blk = {"stride": stride if b == 0 else 1}
            blk["w1"], blk["b1"] = _fold_conv_bn(nk(), nk(), 1, 1, in_a, mid,
                                                 cin_p=in_p, cout_p=mid_p)
            blk["w2"], blk["b2"] = _fold_conv_bn(nk(), nk(), 3, 3, mid, mid,
                                                 cin_p=mid_p, cout_p=mid_p)
            blk["w3"], blk["b3"] = _fold_conv_bn(nk(), nk(), 1, 1, mid, out_c,
                                                 cin_p=mid_p)
            if b == 0:
                blk["wd"], blk["bd"] = _fold_conv_bn(nk(), nk(), 1, 1, in_a,
                                                     out_c, cin_p=in_p)
            blocks.append(blk)
            in_a, in_p = out_c, out_c
        layers.append(blocks)
    params["layers"] = layers
    return params


# ----------------------------------------------------------------------------
# Forward pass (ResNetEmbedder.forward)
# ----------------------------------------------------------------------------
def _bottleneck(x, blk):
    s = blk["stride"]
    identity = x
    out = conv1x1_bn(x, blk["w1"], blk["b1"], apply_relu=True)
    out = conv_kk_bn(out, blk["w2"], blk["b2"], kh=3, kw=3, stride=s,
                     padding=1, apply_relu=True)
    if "wd" in blk:
        identity = conv1x1_bn(x, blk["wd"], blk["bd"], stride=s,
                              apply_relu=False)
    # conv3 + bn3 + residual add + relu fused in one matmul kernel epilogue.
    out = conv1x1_bn(out, blk["w3"], blk["b3"], apply_relu=True,
                     residual=identity)
    return out


def resnet_embedder_forward(x_nchw, params):
    # x_nchw: (B, 3, H, W) float32, as in PyTorch.
    x = jnp.transpose(x_nchw, (0, 2, 3, 1)).astype(ACT_DTYPE)   # -> NHWC bf16
    x = conv1_7x7(x, params["conv1_w"], params["conv1_b"])      # (B,H/2,W/2,128)
    x = maxpool_3x3_s2(x)                                       # (B,H/4,W/4,128)
    for blocks in params["layers"]:
        for blk in blocks:
            x = _bottleneck(x, blk)
    emb = global_avg_pool(x)                  # (B, 2048) f32
    # Matches PyTorch `.squeeze()` (would also drop the batch dim if B == 1).
    return jnp.squeeze(emb)


# ----------------------------------------------------------------------------
if __name__ == "__main__":
    key = jax.random.PRNGKey(0)
    kp, kx = jax.random.split(key)
    params = init_resnet50_params(kp)

    # Small input consistent with the module: batch=2, 3 channels, 64x64.
    x = jax.random.normal(kx, (2, 3, 64, 64), jnp.float32)

    emb = resnet_embedder_forward(x, params)
    emb = jax.block_until_ready(emb)

    assert emb.shape == (2, 2048), emb.shape
    assert bool(jnp.all(jnp.isfinite(emb.astype(jnp.float32))))
    print("KERNEL_OK")
</pallas_src>

<mosaic_0001>
module attributes {stable_mosaic.version = 11 : i64} {
  func.func @_mm_kernel(%arg0: i32, %arg1: i32, %arg2: memref<512x160xbf16, #tpu.memory_space<vmem>>, %arg3: memref<160x128xbf16, #tpu.memory_space<vmem>>, %arg4: memref<1x128xf32, #tpu.memory_space<vmem>>, %arg5: memref<512x128xbf16, #tpu.memory_space<vmem>>) attributes {dimension_semantics = [#tpu.dimension_semantics<parallel>, #tpu.dimension_semantics<parallel>], iteration_bounds = array<i64: 4, 1>, scalar_prefetch = 0 : i64, scratch_operands = 0 : i64, tpu.core_type = #tpu.core_type<tc>, window_params = [{transform_indices = @transform_0, window_bounds = array<i64: 512, 160>}, {transform_indices = @transform_1, window_bounds = array<i64: 160, 128>}, {transform_indices = @transform_2, window_bounds = array<i64: 1, 128>}, {transform_indices = @transform_3, window_bounds = array<i64: 512, 128>}]} {
    %c0 = arith.constant 0 : index
    %c0_0 = arith.constant 0 : index
    %0 = vector.load %arg2[%c0, %c0_0] : memref<512x160xbf16, #tpu.memory_space<vmem>>, vector<512x160xbf16>
    %c0_1 = arith.constant 0 : index
    %c0_2 = arith.constant 0 : index
    %1 = vector.load %arg3[%c0_1, %c0_2] : memref<160x128xbf16, #tpu.memory_space<vmem>>, vector<160x128xbf16>
    %cst = arith.constant dense<0.000000e+00> : vector<512x128xf32>
    %2 = tpu.matmul %0, %1, %cst {dimension_numbers = #tpu.dot_dimension_numbers<[1], [0], [0], [1], [0, 0, 1, 1], [], []>} : vector<512x160xbf16>, vector<160x128xbf16>, vector<512x128xf32> -> vector<512x128xf32>
    %c0_3 = arith.constant 0 : index
    %c0_4 = arith.constant 0 : index
    %3 = vector.load %arg4[%c0_3, %c0_4] : memref<1x128xf32, #tpu.memory_space<vmem>>, vector<1x128xf32>
    %4 = vector.broadcast %3 : vector<1x128xf32> to vector<512x128xf32>
    %5 = arith.addf %2, %4 : vector<512x128xf32>
    %cst_5 = arith.constant 0.000000e+00 : f32
    %6 = vector.broadcast %cst_5 : f32 to vector<512x128xf32>
    %7 = arith.maximumf %5, %6 : vector<512x128xf32>
    %8 = arith.truncf %7 : vector<512x128xf32> to vector<512x128xbf16>
    %c0_6 = arith.constant 0 : index
    %c0_7 = arith.constant 0 : index
    %9 = vector.load %arg5[%c0_6, %c0_7] : memref<512x128xbf16, #tpu.memory_space<vmem>>, vector<512x128xbf16>
    tpu.vector_store %arg5[%c0_6, %c0_7], %8 {strides = array<i32>} : memref<512x128xbf16, #tpu.memory_space<vmem>>, vector<512x128xbf16>,
    return
  }
  func.func @transform_0(%arg0: i32, %arg1: i32) -> (i32, i32) {
    %c0_i32 = arith.constant 0 : i32
    %c0_i32_0 = arith.constant 0 : i32
    return %arg0, %c0_i32 : i32, i32
  }
  func.func @transform_1(%arg0: i32, %arg1: i32) -> (i32, i32) {
    %c0_i32 = arith.constant 0 : i32
    %c0_i32_0 = arith.constant 0 : i32
    return %c0_i32, %arg1 : i32, i32
  }
  func.func @transform_2(%arg0: i32, %arg1: i32) -> (i32, i32) {
    %c0_i32 = arith.constant 0 : i32
    %c0_i32_0 = arith.constant 0 : i32
    return %c0_i32, %arg1 : i32, i32
  }
  func.func @transform_3(%arg0: i32, %arg1: i32) -> (i32, i32) {
    %c0_i32 = arith.constant 0 : i32
    return %arg0, %arg1 : i32, i32
  }
}

</mosaic_0001>

<bundles_post_ra>
// kernel: tpu_custom_call.1
= control target key start
LH: loop header
LB: loop body
LE: loop exit
PB: predicated region body
PF: predicated region fallthrough
CT: control target
= control target key end

     0   :  { %8 = vsyncpa [#allocation3], 0  ;;  %s2626_s0 = inlined_call_operand.vmem [shape: bf16[2048,160], index: 0, kind: input, shape index: {}]   ;;  %s2627_s1 = inlined_call_operand.vmem [shape: bf16[160,128], index: 1, kind: input, shape index: {}]   ;;  %s2628_s2 = inlined_call_operand.vmem [shape: f32[1,128], index: 2, kind: input, shape index: {}]   ;;  %s2629_s3 = inlined_call_operand.hbm [shape: bf16[2048,128], index: 3, kind: output, shape index: {}]  }
   0x1   :  { %10 = vsyncpa [#allocation3 + $0x1], 0  ;;  %s2276_s12 = smov 0   ;;  %s2278_s13 = smov 0  }
   0x2   :  { %s2280_s14 = smov 0   ;;  %s2282_s15 = smov 0  }
   0x3   :  { %s2284_s16 = smov 0   ;;  %s2286_s17 = smov 0  }
   0x4 LB: > { %s1544_s18 = sadd.s32 4294967295, %s2250_s17   ;;  %s1545_s19 = sadd.s32 4294967294, %s2250_s17   ;;  %s2250_s17 = sphi %s2286_s17, %s16_s17   ;;  %s2246_s16 = sphi %s2284_s16, %s2636_s16   ;;  %s2242_s15 = sphi %s2282_s15, %s2635_s15   ;;  %s2238_s14 = sphi %s2280_s14, %s2634_s14   ;;  %s2234_s13 = sphi %s2278_s13, %s2633_s13   ;;  %s2230_s12 = sphi %s2276_s12, %s2632_s12  }
   0x5   : > { %s28_s20 = sadd.s32 1, %s2246_s16  ;;  %s115_s21 = sadd.s32 1, %s2238_s14 }
   0x6   : > { %p30_p0 = scmp.ge.s32.totalorder %s28_s20, 4  ;;  %p125_p1 = scmp.ne.s32.totalorder %s2238_s14, %s2234_s13 }
   0x7   : > { %p126_p2 = scmp.eq.s32.totalorder %s1544_s18, 3  ;;  %p131_p3 = scmp.ne.s32.totalorder %s2234_s13, %s2230_s12 }
   0x8   : > { %s2638_s20 = smov (%p30_p0, %s28_s20), 0  ;;  %p132_p5 = scmp.eq.s32.totalorder %s1545_s19, 3 }
   0x9   : > { %p2316_p4 = por %p126_p2, %p125_p1  ;;  %s110_s23 = ssub.s32 %s2246_s16, %s2638_s20 }
   0xa   : > { %p1550_p6 = scmp.ge.s32.totalorder %s2250_s17, 1  ;;  %p113_p7 = scmp.eq.s32.totalorder %s110_s23, 0 }
   0xb   : > { %p2323_p8 = por %p132_p5, %p131_p3  ;;  %p173_p9 = scmp.lt.s32.totalorder %s2250_s17, 5 }
   0xc   : > { %s2329_s25 = scalar_select %p113_p7, %s2238_s14, %s115_s21  }
   0xd   : > { %p174_p10 = pnand %p1550_p6, %p173_p9 }
   0xe   : > { %v2066_v0 = vld [vmem:[%s2627_s1] sm:$0xff] (!%p174_p10)   ;;  %v2252_v1 = vmov (!%p174_p10), 0   ;;  %s1552_s28 = sshll.u32 (!%p174_p10), %s2242_s15, 6  ;;  %v2067_v2 = vld [vmem:[%s2627_s1 + $0x8] sm:$0xff] (!%p174_p10)   ;;  %v2068_v3 = vld [vmem:[%s2627_s1 + $0x10] sm:$0xff] (!%p174_p10)   ;;  %vm660_vm0 = vcmask (!%p174_p10), 261120  }
   0xf   : > { %177 = sbr.rel (%p174_p10) target bundleno = 410 (0x19a), region = 32  ;;  %757 = vmatprep.subr.bf16.mxu0 (!%p174_p10), %v2252_v1  ;;  %1988 = vmatprep.subr.bf16.mxu1 (!%p174_p10), %v2252_v1  ;;  %p206_p11 = scmp.lt.s32.totalorder (!%p174_p10), %s1552_s28, 255  ;;  %v2069_v4 = vld [vmem:[%s2627_s1 + $0x18] sm:$0xff] (!%p174_p10)   ;;  %v2070_v7 = vld [vmem:[%s2627_s1 + $0x20] sm:$0xff] (!%p174_p10)   ;;  %v2071_v8 = vld [vmem:[%s2627_s1 + $0x28] sm:$0xff] (!%p174_p10)  }
  0x10   : > { %758 = vmatpush1.bf16.msra.mxu0 (!%p174_p10), %v2066_v0  ;;  %1998 = vmatpush1.bf16.msra.mxu1 (!%p174_p10), %v2066_v0  ;;  %v2072_v9 = vld [vmem:[%s2627_s1 + $0x30] sm:$0xff] (!%p174_p10)   ;;  %v2073_v10 = vld [vmem:[%s2627_s1 + $0x38] sm:$0xff] (!%p174_p10)   ;;  %v2074_v11 = vld [vmem:[%s2627_s1 + $0x40] sm:$0xff] (!%p174_p10)   ;;  %s202_s10 = sand.u32 (!%p174_p10), 1, %s2234_s13   ;;  %s1796_s18 = sshll.u32 (!%p174_p10), %s2242_s15, 12 }
  0x11   : > { %759 = vmatprep.subr.bf16.mxu0 (!%p174_p10), %v2252_v1  ;;  %1989 = vmatprep.subr.bf16.mxu1 (!%p174_p10), %v2252_v1  ;;  %v2075_v12 = vld [vmem:[%s2627_s1 + $0x48] sm:$0xff] (!%p174_p10)   ;;  %s2572_s26 = scalar_lea.hbm (!%p174_p10), %s2629_s3, %s1796_s18  ;;  %s2580_s15 = scalar_lea.sflag (!%p174_p10), [#allocation3], %s202_s10 }
  0x14   : > { %760 = vmatpush1.bf16.msra.mxu0 (!%p174_p10), %v2067_v2  ;;  %1999 = vmatpush1.bf16.msra.mxu1 (!%p174_p10), %v2067_v2 }
  0x15   : > { %761 = vmatprep.subr.bf16.mxu0 (!%p174_p10), %v2252_v1  ;;  %1990 = vmatprep.subr.bf16.mxu1 (!%p174_p10), %v2252_v1 }
  0x16   : > { %s2640_s28 = smov (!%p206_p11, %s1552_s28), 255 }
  0x17   : > { %s1731_s6 = sshll.u32 %s2640_s28, 3  ;;  %s2253_s28 = smov [#allocation2]  }
  0x18   : > { %s2344_s9 = scalar_lea.vmem %s2626_s0, %s1731_s6  ;;  %762 = vmatpush1.bf16.msra.mxu0 %v2068_v3  ;;  %2000 = vmatpush1.bf16.msra.mxu1 %v2068_v3  ;;  %s2176_s29 = sshll.u32 %s2253_s28, 4  ;;  %s2177_s29 = int_to_ptr.vmem [resolvable:$false] %s2176_s29 }
  0x19   : > { %763 = vmatprep.subr.bf16.mxu0 %v2252_v1  ;;  %1991 = vmatprep.subr.bf16.mxu1 %v2252_v1  ;;  %v2078_v5 = vld [vmem:[%s2344_s9 + $0x4] ss:$8 sps:$4 sm:$0xff]   ;;  %v2076_v13 = vld [vmem:[%s2344_s9] ss:$8 sps:$4 sm:$0xff]   ;;  %v2082_v15 = vld [vmem:[%s2344_s9 + $0x14] ss:$8 sps:$4 sm:$0xff]  }
  0x1a   : > { %v2081_v6 = vld [vmem:[%s2344_s9 + $0x104] ss:$8 sps:$4 sm:$0xff]   ;;  %1630 = vmatprep.mubr.msk.bf16.mxu0 %vm660_vm0, %v2078_v5  ;;  %v2079_v14 = vld [vmem:[%s2344_s9 + $0x100] ss:$8 sps:$4 sm:$0xff]   ;;  %v2084_v16 = vld [vmem:[%s2344_s9 + $0x114] ss:$8 sps:$4 sm:$0xff]  }
  0x1b   : > { %1646 = vmatprep.mubr.msk.bf16.mxu1 %vm660_vm0, %v2081_v6  ;;  %v2086_v17 = vld [vmem:[%s2344_s9 + $0x10] ss:$8 sps:$4 sm:$0xff]   ;;  %v2088_v19 = vld [vmem:[%s2344_s9 + $0x24] ss:$8 sps:$4 sm:$0xff]   ;;  %v2092_v21 = vld [vmem:[%s2344_s9 + $0x20] ss:$8 sps:$4 sm:$0xff]  }
  0x1c   : > { %764 = vmatpush1.bf16.msra.mxu0 %v2069_v4  ;;  %2001 = vmatpush1.bf16.msra.mxu1 %v2069_v4  ;;  %v2087_v18 = vld [vmem:[%s2344_s9 + $0x110] ss:$8 sps:$4 sm:$0xff]   ;;  %v2090_v20 = vld [vmem:[%s2344_s9 + $0x124] ss:$8 sps:$4 sm:$0xff]   ;;  %v2093_v22 = vld [vmem:[%s2344_s9 + $0x120] ss:$8 sps:$4 sm:$0xff]  }
  0x1d   : > { %765 = vmatprep.subr.bf16.mxu0 %v2252_v1  ;;  %1992 = vmatprep.subr.bf16.mxu1 %v2252_v1  ;;  %v2094_v23 = vld [vmem:[%s2344_s9 + $0x34] ss:$8 sps:$4 sm:$0xff]   ;;  %v2098_v25 = vld [vmem:[%s2344_s9 + $0x30] ss:$8 sps:$4 sm:$0xff]   ;;  %v2100_v27 = vld [vmem:[%s2344_s9 + $0x44] ss:$8 sps:$4 sm:$0xff]  }
  0x1e   : > { %v2096_v24 = vld [vmem:[%s2344_s9 + $0x134] ss:$8 sps:$4 sm:$0xff]   ;;  %v2099_v26 = vld [vmem:[%s2344_s9 + $0x130] ss:$8 sps:$4 sm:$0xff]   ;;  %v2102_v28 = vld [vmem:[%s2344_s9 + $0x144] ss:$8 sps:$4 sm:$0xff]  }
  0x1f   : > { %v2104_v29 = vld [vmem:[%s2344_s9 + $0x40] ss:$8 sps:$4 sm:$0xff]   ;;  %v2106_v31 = vld [vmem:[%s2344_s9 + $0x54] ss:$8 sps:$4 sm:$0xff]   ;;  %v2110_v33 = vld [vmem:[%s2344_s9 + $0x50] ss:$8 sps:$4 sm:$0xff]  }
  0x20   : > { %766 = vmatpush1.bf16.msra.mxu0 %v2070_v7  ;;  %2002 = vmatpush1.bf16.msra.mxu1 %v2070_v7  ;;  %v2105_v30 = vld [vmem:[%s2344_s9 + $0x140] ss:$8 sps:$4 sm:$0xff]   ;;  %v2108_v32 = vld [vmem:[%s2344_s9 + $0x154] ss:$8 sps:$4 sm:$0xff]   ;;  %v2111_v34 = vld [vmem:[%s2344_s9 + $0x150] ss:$8 sps:$4 sm:$0xff]  }
  0x21   : > { %767 = vmatprep.subr.bf16.mxu0 %v2252_v1  ;;  %1993 = vmatprep.subr.bf16.mxu1 %v2252_v1  ;;  %v2112_v35 = vld [vmem:[%s2344_s9 + $0x64] ss:$8 sps:$4 sm:$0xff]   ;;  %v2116_v37 = vld [vmem:[%s2344_s9 + $0x60] ss:$8 sps:$4 sm:$0xff]   ;;  %v2118_v39 = vld [vmem:[%s2344_s9 + $0x74] ss:$8 sps:$4 sm:$0xff]  }
  0x22   : > { %v2114_v36 = vld [vmem:[%s2344_s9 + $0x164] ss:$8 sps:$4 sm:$0xff]   ;;  %v2117_v38 = vld [vmem:[%s2344_s9 + $0x160] ss:$8 sps:$4 sm:$0xff]   ;;  %v2120_v40 = vld [vmem:[%s2344_s9 + $0x174] ss:$8 sps:$4 sm:$0xff]  }
  0x23   : > { %v2122_v41 = vld [vmem:[%s2344_s9 + $0x70] ss:$8 sps:$4 sm:$0xff]   ;;  %v2124_v43 = vld [vmem:[%s2344_s9 + $0x84] ss:$8 sps:$4 sm:$0xff]   ;;  %v2128_v45 = vld [vmem:[%s2344_s9 + $0x80] ss:$8 sps:$4 sm:$0xff]  }
  0x24   : > { %768 = vmatpush1.bf16.msra.mxu0 %v2071_v8  ;;  %2003 = vmatpush1.bf16.msra.mxu1 %v2071_v8  ;;  %v2123_v42 = vld [vmem:[%s2344_s9 + $0x170] ss:$8 sps:$4 sm:$0xff]   ;;  %v2126_v44 = vld [vmem:[%s2344_s9 + $0x184] ss:$8 sps:$4 sm:$0xff]   ;;  %v2129_v46 = vld [vmem:[%s2344_s9 + $0x180] ss:$8 sps:$4 sm:$0xff]  }
  0x25   : > { %769 = vmatprep.subr.bf16.mxu0 %v2252_v1  ;;  %1994 = vmatprep.subr.bf16.mxu1 %v2252_v1  ;;  %v2130_v47 = vld [vmem:[%s2344_s9 + $0x94] ss:$8 sps:$4 sm:$0xff]   ;;  %v2134_v49 = vld [vmem:[%s2344_s9 + $0x90] ss:$8 sps:$4 sm:$0xff]   ;;  %v2136_v51 = vld [vmem:[%s2344_s9 + $0xa4] ss:$8 sps:$4 sm:$0xff]  }
  0x26   : > { %v2132_v48 = vld [vmem:[%s2344_s9 + $0x194] ss:$8 sps:$4 sm:$0xff]   ;;  %v2135_v50 = vld [vmem:[%s2344_s9 + $0x190] ss:$8 sps:$4 sm:$0xff]   ;;  %v2138_v52 = vld [vmem:[%s2344_s9 + $0x1a4] ss:$8 sps:$4 sm:$0xff]  }
  0x27   : > { %v2140_v53 = vld [vmem:[%s2344_s9 + $0xa0] ss:$8 sps:$4 sm:$0xff]   ;;  %v2142_v55 = vld [vmem:[%s2344_s9 + $0xb4] ss:$8 sps:$4 sm:$0xff]   ;;  %v2146_v57 = vld [vmem:[%s2344_s9 + $0xb0] ss:$8 sps:$4 sm:$0xff]  }
  0x28   : > { %770 = vmatpush1.bf16.msra.mxu0 %v2072_v9  ;;  %2004 = vmatpush1.bf16.msra.mxu1 %v2072_v9  ;;  %v2141_v54 = vld [vmem:[%s2344_s9 + $0x1a0] ss:$8 sps:$4 sm:$0xff]   ;;  %v2144_v56 = vld [vmem:[%s2344_s9 + $0x1b4] ss:$8 sps:$4 sm:$0xff]   ;;  %v2147_v58 = vld [vmem:[%s2344_s9 + $0x1b0] ss:$8 sps:$4 sm:$0xff]  }
  0x29   : > { %771 = vmatprep.subr.bf16.mxu0 %v2252_v1  ;;  %1995 = vmatprep.subr.bf16.mxu1 %v2252_v1  ;;  %v2148_v59 = vld [vmem:[%s2344_s9 + $0xc4] ss:$8 sps:$4 sm:$0xff]   ;;  %v2152_v61 = vld [vmem:[%s2344_s9 + $0xc0] ss:$8 sps:$4 sm:$0xff]   ;;  %v2154_v63 = vld [vmem:[%s2344_s9 + $0xd4] ss:$8 sps:$4 sm:$0xff]  }
  0x2a   : > { %v2150_v60 = vld [vmem:[%s2344_s9 + $0x1c4] ss:$8 sps:$4 sm:$0xff]   ;;  %v2153_v62 = vld [vmem:[%s2344_s9 + $0x1c0] ss:$8 sps:$4 sm:$0xff]   ;;  %v2156_v0 = vld [vmem:[%s2344_s9 + $0x1d4] ss:$8 sps:$4 sm:$0xff]  }
  0x2b   : > { %v2159_v2 = vld [vmem:[%s2344_s9 + $0x1d0] ss:$8 sps:$4 sm:$0xff]   ;;  %v2160_v3 = vld [vmem:[%s2344_s9 + $0xe4] ss:$8 sps:$4 sm:$0xff]   ;;  %v2164_v5 = vld [vmem:[%s2344_s9 + $0xe0] ss:$8 sps:$4 sm:$0xff]  }
  0x2c   : > { %772 = vmatpush1.bf16.msra.mxu0 %v2073_v10  ;;  %2005 = vmatpush1.bf16.msra.mxu1 %v2073_v10  ;;  %v2162_v4 = vld [vmem:[%s2344_s9 + $0x1e4] ss:$8 sps:$4 sm:$0xff]   ;;  %v2165_v6 = vld [vmem:[%s2344_s9 + $0x1e0] ss:$8 sps:$4 sm:$0xff]   ;;  %v2166_v7 = vld [vmem:[%s2344_s9 + $0xf4] ss:$8 sps:$4 sm:$0xff]  }
  0x2d   : > { %773 = vmatprep.subr.bf16.mxu0 %v2252_v1  ;;  %1996 = vmatprep.subr.bf16.mxu1 %v2252_v1  ;;  %v2168_v8 = vld [vmem:[%s2344_s9 + $0x1f4] ss:$8 sps:$4 sm:$0xff]   ;;  %v2170_v9 = vld [vmem:[%s2344_s9 + $0xf0] ss:$8 sps:$4 sm:$0xff]   ;;  %s2178_s30 = scalar_lea.vmem %s2177_s29, 8192 }
  0x2e   : > { %v2171_v10 = vld [vmem:[%s2344_s9 + $0x1f0] ss:$8 sps:$4 sm:$0xff]  }
  0x30   : > { %774 = vmatpush1.bf16.msra.mxu0 %v2074_v11  ;;  %2006 = vmatpush1.bf16.msra.mxu1 %v2074_v11  ;;  %v2466_v11 = vld [vmem:[%s2628_s2] ss:$0 sm:$0xff] }
  0x31   : > { %775 = vmatprep.subr.bf16.mxu0 %v2252_v1  ;;  %1997 = vmatprep.subr.bf16.mxu1 %v2252_v1  ;;  %v2158_v1 = vld [vmem:[%s2344_s9 + $0xd0] ss:$8 sps:$4 sm:$0xff]   ;;  %s1551_s9 = sshll.u32 %s202_s10, 8 }
  0x32   : > { %s2475_s11 = scalar_lea.vmem [#allocation2], %s1551_s9 }
  0x33   : > { %s1445_s19 = sshll.u32 %s2475_s11, 4  ;;  %s2574_s19 = int_to_ptr.vmem [resolvable:$true] %s1445_s19 }
  0x34   : > { %776 = vmatpush1.bf16.msra.mxu0 %v2075_v12  ;;  %2007 = vmatpush1.bf16.msra.mxu1 %v2075_v12  ;;  %s2172_s27 = scalar_lea.vmem %s2574_s19, 4096  ;;  %p2179_p1 = scmp.lt.s32.totalorder %s2574_s19, %s2177_s29 }
  0x35   : > { %p2173_p12 = scmp.ne.s32.totalorder %s2574_s19, %s2172_s27  ;;  %p2180_p2 = scmp.lt.s32.totalorder %s2178_s30, %s2172_s27 }
  0x37   : > { %790 = vmatmul.mubr.bf16.vlgmr.msra.gmra.mrb[0].mxu0 %v2076_v13  ;;  %918 = vmatmul.mubr.bf16.vlgmr.msra.gmra.mrb[0].mxu1 %v2079_v14  ;;  %p2174_p13 = pnand %p2173_p12, %p2316_p4  ;;  %p2181_p3 = por %p2180_p2, %p2179_p1 }
  0x38   : > { %1631 = vmatprep.mubr.msk.bf16.mxu0 %vm660_vm0, %v2082_v15  ;;  %1647 = vmatprep.mubr.msk.bf16.mxu1 %vm660_vm0, %v2084_v16 }
  0x39   : > { %p2175_p0 = pneg %p2174_p13 }
  0x3b   : > { %p2182_p5 = pnand %p2181_p3, %p2175_p0 }
  0x3f   : > { %798 = vmatmul.mubr.bf16.gmra.mrb[4].mxu0 %v2086_v17  ;;  %926 = vmatmul.mubr.bf16.gmra.mrb[4].mxu1 %v2087_v18 }
  0x40   : > { %1632 = vmatprep.mubr.msk.bf16.mxu0 %vm660_vm0, %v2088_v19  ;;  %1648 = vmatprep.mubr.msk.bf16.mxu1 %vm660_vm0, %v2090_v20 }
  0x47   : > { %806 = vmatmul.mubr.bf16.gmra.mrb[8].mxu0 %v2092_v21  ;;  %934 = vmatmul.mubr.bf16.gmra.mrb[8].mxu1 %v2093_v22 }
  0x48   : > { %1633 = vmatprep.mubr.msk.bf16.mxu0 %vm660_vm0, %v2094_v23  ;;  %1649 = vmatprep.mubr.msk.bf16.mxu1 %vm660_vm0, %v2096_v24 }
  0x4f   : > { %814 = vmatmul.mubr.bf16.gmra.mrb[12].mxu0 %v2098_v25  ;;  %942 = vmatmul.mubr.bf16.gmra.mrb[12].mxu1 %v2099_v26 }
  0x50   : > { %1634 = vmatprep.mubr.msk.bf16.mxu0 %vm660_vm0, %v2100_v27  ;;  %1650 = vmatprep.mubr.msk.bf16.mxu1 %vm660_vm0, %v2102_v28 }
  0x57   : > { %822 = vmatmul.mubr.bf16.gmra.mrb[16].mxu0 %v2104_v29  ;;  %950 = vmatmul.mubr.bf16.gmra.mrb[16].mxu1 %v2105_v30 }
  0x58   : > { %1635 = vmatprep.mubr.msk.bf16.mxu0 %vm660_vm0, %v2106_v31  ;;  %1651 = vmatprep.mubr.msk.bf16.mxu1 %vm660_vm0, %v2108_v32 }
  0x5f   : > { %830 = vmatmul.mubr.bf16.gmra.mrb[20].mxu0 %v2110_v33  ;;  %958 = vmatmul.mubr.bf16.gmra.mrb[20].mxu1 %v2111_v34 }
  0x60   : > { %1636 = vmatprep.mubr.msk.bf16.mxu0 %vm660_vm0, %v2112_v35  ;;  %1652 = vmatprep.mubr.msk.bf16.mxu1 %vm660_vm0, %v2114_v36 }
  0x67   : > { %838 = vmatmul.mubr.bf16.gmra.mrb[24].mxu0 %v2116_v37  ;;  %966 = vmatmul.mubr.bf16.gmra.mrb[24].mxu1 %v2117_v38 }
  0x68   : > { %1637 = vmatprep.mubr.msk.bf16.mxu0 %vm660_vm0, %v2118_v39  ;;  %1653 = vmatprep.mubr.msk.bf16.mxu1 %vm660_vm0, %v2120_v40 }
  0x6f   : > { %846 = vmatmul.mubr.bf16.gmra.mrb[28].mxu0 %v2122_v41  ;;  %974 = vmatmul.mubr.bf16.gmra.mrb[28].mxu1 %v2123_v42 }
  0x70   : > { %1638 = vmatprep.mubr.msk.bf16.mxu0 %vm660_vm0, %v2124_v43  ;;  %1654 = vmatprep.mubr.msk.bf16.mxu1 %vm660_vm0, %v2126_v44 }
  0x77   : > { %854 = vmatmul.mubr.bf16.gmra.mrb[32].mxu0 %v2128_v45  ;;  %982 = vmatmul.mubr.bf16.gmra.mrb[32].mxu1 %v2129_v46 }
  0x78   : > { %1639 = vmatprep.mubr.msk.bf16.mxu0 %vm660_vm0, %v2130_v47  ;;  %1655 = vmatprep.mubr.msk.bf16.mxu1 %vm660_vm0, %v2132_v48 }
  0x7f   : > { %862 = vmatmul.mubr.bf16.gmra.mrb[36].mxu0 %v2134_v49  ;;  %990 = vmatmul.mubr.bf16.gmra.mrb[36].mxu1 %v2135_v50 }
  0x80   : > { %1640 = vmatprep.mubr.msk.bf16.mxu0 %vm660_vm0, %v2136_v51  ;;  %1656 = vmatprep.mubr.msk.bf16.mxu1 %vm660_vm0, %v2138_v52 }
  0x87   : > { %870 = vmatmul.mubr.bf16.gmra.mrb[40].mxu0 %v2140_v53  ;;  %998 = vmatmul.mubr.bf16.gmra.mrb[40].mxu1 %v2141_v54 }
  0x88   : > { %1641 = vmatprep.mubr.msk.bf16.mxu0 %vm660_vm0, %v2142_v55  ;;  %1657 = vmatprep.mubr.msk.bf16.mxu1 %vm660_vm0, %v2144_v56 }
  0x8f   : > { %878 = vmatmul.mubr.bf16.gmra.mrb[44].mxu0 %v2146_v57  ;;  %1006 = vmatmul.mubr.bf16.gmra.mrb[44].mxu1 %v2147_v58 }
  0x90   : > { %1642 = vmatprep.mubr.msk.bf16.mxu0 %vm660_vm0, %v2148_v59  ;;  %1658 = vmatprep.mubr.msk.bf16.mxu1 %vm660_vm0, %v2150_v60 }
  0x97   : > { %886 = vmatmul.mubr.bf16.gmra.mrb[48].mxu0 %v2152_v61  ;;  %1014 = vmatmul.mubr.bf16.gmra.mrb[48].mxu1 %v2153_v62 }
  0x98   : > { %1643 = vmatprep.mubr.msk.bf16.mxu0 %vm660_vm0, %v2154_v63  ;;  %1659 = vmatprep.mubr.msk.bf16.mxu1 %vm660_vm0, %v2156_v0 }
  0x9f   : > { %894 = vmatmul.mubr.bf16.gmra.mrb[52].mxu0 %v2158_v1  ;;  %1022 = vmatmul.mubr.bf16.gmra.mrb[52].mxu1 %v2159_v2 }
  0xa0   : > { %1644 = vmatprep.mubr.msk.bf16.mxu0 %vm660_vm0, %v2160_v3  ;;  %1660 = vmatprep.mubr.msk.bf16.mxu1 %vm660_vm0, %v2162_v4 }
  0xa7   : > { %902 = vmatmul.mubr.bf16.gmra.mrb[56].mxu0 %v2164_v5  ;;  %1030 = vmatmul.mubr.bf16.gmra.mrb[56].mxu1 %v2165_v6 }
  0xa8   : > { %1645 = vmatprep.mubr.msk.bf16.mxu0 %vm660_vm0, %v2166_v7  ;;  %1661 = vmatprep.mubr.msk.bf16.mxu1 %vm660_vm0, %v2168_v8 }
  0xaf   : > { %910 = vmatmul.mubr.bf16.gmra.mrb[60].mxu0 %v2170_v9  ;;  %1038 = vmatmul.mubr.bf16.gmra.mrb[60].mxu1 %v2171_v10 }
 0x10a   : > { %v791_v12 = vpop.f32.mrb[0].mxu0  ;;  %v919_v13 = vpop.f32.mrb[0].mxu1 }
 0x10b   : > { %v792_v14 = vadd.f32 %v2466_v11, %v791_v12  ;;  %v920_v15 = vadd.f32 %v2466_v11, %v919_v13  ;;  %v793_v16 = vpop.f32.mrb[1].mxu0  ;;  %v921_v17 = vpop.f32.mrb[1].mxu1 }
 0x10c   : > { %v794_v18 = vpop.f32.mrb[2].mxu0  ;;  %v922_v19 = vpop.f32.mrb[2].mxu1 }
 0x10d   : > { %v795_v20 = vadd.f32 %v2466_v11, %v794_v18  ;;  %v923_v21 = vadd.f32 %v2466_v11, %v922_v19  ;;  %v796_v22 = vpop.f32.mrb[3].mxu0  ;;  %v924_v23 = vpop.f32.mrb[3].mxu1  ;;  %v1046_v24 = vmax.f32 %v792_v14, 0.0  ;;  %v1078_v25 = vmax.f32 %v920_v15, 0.0 }
 0x10f   : > { %v1047_v26 = vmax.f32 %v795_v20, 0.0  ;;  %v1079_v27 = vmax.f32 %v923_v21, 0.0 }
 0x111   : > { %v1800_v28 = vpack.c.bf16 %v1047_v26, %v1046_v24  ;;  %v1880_v29 = vpack.c.bf16 %v1079_v27, %v1078_v25 }
 0x112   : > { %v799_v30 = vpop.f32.mrb[4].mxu0  ;;  %v927_v31 = vpop.f32.mrb[4].mxu1 }
 0x113   : > { %1801 = vst [vmem:[%s2475_s11] sm:$0xff] %v1800_v28   ;;  %1972 = vst [vmem:[%s2475_s11 + $0x80] sm:$0xff] %v1880_v29   ;;  %v800_v32 = vadd.f32 %v2466_v11, %v799_v30  ;;  %v928_v33 = vadd.f32 %v2466_v11, %v927_v31  ;;  %v801_v34 = vpop.f32.mrb[5].mxu0  ;;  %v929_v35 = vpop.f32.mrb[5].mxu1 }
 0x114   : > { %v802_v36 = vpop.f32.mrb[6].mxu0  ;;  %v930_v37 = vpop.f32.mrb[6].mxu1 }
 0x115   : > { %v803_v38 = vadd.f32 %v2466_v11, %v802_v36  ;;  %v931_v39 = vadd.f32 %v2466_v11, %v930_v37  ;;  %v804_v40 = vpop.f32.mrb[7].mxu0  ;;  %v932_v41 = vpop.f32.mrb[7].mxu1  ;;  %v1048_v42 = vmax.f32 %v800_v32, 0.0  ;;  %v1080_v43 = vmax.f32 %v928_v33, 0.0 }
 0x117   : > { %v1049_v44 = vmax.f32 %v803_v38, 0.0  ;;  %v1081_v45 = vmax.f32 %v931_v39, 0.0 }
 0x119   : > { %v1805_v46 = vpack.c.bf16 %v1049_v44, %v1048_v42  ;;  %v1885_v47 = vpack.c.bf16 %v1081_v45, %v1080_v43 }
 0x11a   : > { %v807_v48 = vpop.f32.mrb[8].mxu0  ;;  %v935_v49 = vpop.f32.mrb[8].mxu1 }
 0x11b   : > { %1957 = vst [vmem:[%s2475_s11 + $0x8] sm:$0xff] %v1805_v46   ;;  %1973 = vst [vmem:[%s2475_s11 + $0x88] sm:$0xff] %v1885_v47   ;;  %v808_v50 = vadd.f32 %v2466_v11, %v807_v48  ;;  %v936_v51 = vadd.f32 %v2466_v11, %v935_v49  ;;  %v809_v52 = vpop.f32.mrb[9].mxu0  ;;  %v937_v53 = vpop.f32.mrb[9].mxu1 }
 0x11c   : > { %v810_v54 = vpop.f32.mrb[10].mxu0  ;;  %v938_v55 = vpop.f32.mrb[10].mxu1 }
 0x11d   : > { %v811_v56 = vadd.f32 %v2466_v11, %v810_v54  ;;  %v939_v57 = vadd.f32 %v2466_v11, %v938_v55  ;;  %v812_v58 = vpop.f32.mrb[11].mxu0  ;;  %v940_v59 = vpop.f32.mrb[11].mxu1  ;;  %v1050_v60 = vmax.f32 %v808_v50, 0.0  ;;  %v1082_v61 = vmax.f32 %v936_v51, 0.0 }
 0x11f   : > { %v1051_v62 = vmax.f32 %v811_v56, 0.0  ;;  %v1083_v63 = vmax.f32 %v939_v57, 0.0 }
 0x121   : > { %v1810_v0 = vpack.c.bf16 %v1051_v62, %v1050_v60  ;;  %v1890_v1 = vpack.c.bf16 %v1083_v63, %v1082_v61 }
 0x122   : > { %v815_v2 = vpop.f32.mrb[12].mxu0  ;;  %v943_v3 = vpop.f32.mrb[12].mxu1 }
 0x123   : > { %1958 = vst [vmem:[%s2475_s11 + $0x10] sm:$0xff] %v1810_v0   ;;  %1974 = vst [vmem:[%s2475_s11 + $0x90] sm:$0xff] %v1890_v1   ;;  %v816_v4 = vadd.f32 %v2466_v11, %v815_v2  ;;  %v944_v5 = vadd.f32 %v2466_v11, %v943_v3  ;;  %v817_v6 = vpop.f32.mrb[13].mxu0  ;;  %v945_v7 = vpop.f32.mrb[13].mxu1 }
 0x124   : > { %v818_v8 = vpop.f32.mrb[14].mxu0  ;;  %v946_v9 = vpop.f32.mrb[14].mxu1 }
 0x125   : > { %v819_v10 = vadd.f32 %v2466_v11, %v818_v8  ;;  %v947_v12 = vadd.f32 %v2466_v11, %v946_v9  ;;  %v820_v13 = vpop.f32.mrb[15].mxu0  ;;  %v948_v14 = vpop.f32.mrb[15].mxu1  ;;  %v1052_v15 = vmax.f32 %v816_v4, 0.0  ;;  %v1084_v16 = vmax.f32 %v944_v5, 0.0 }
 0x127   : > { %v1053_v17 = vmax.f32 %v819_v10, 0.0  ;;  %v1085_v18 = vmax.f32 %v947_v12, 0.0 }
 0x129   : > { %v1815_v19 = vpack.c.bf16 %v1053_v17, %v1052_v15  ;;  %v1895_v20 = vpack.c.bf16 %v1085_v18, %v1084_v16 }
 0x12a   : > { %v823_v21 = vpop.f32.mrb[16].mxu0  ;;  %v951_v22 = vpop.f32.mrb[16].mxu1 }
 0x12b   : > { %1959 = vst [vmem:[%s2475_s11 + $0x18] sm:$0xff] %v1815_v19   ;;  %1975 = vst [vmem:[%s2475_s11 + $0x98] sm:$0xff] %v1895_v20   ;;  %v824_v23 = vadd.f32 %v2466_v11, %v823_v21  ;;  %v952_v24 = vadd.f32 %v2466_v11, %v951_v22  ;;  %v825_v25 = vpop.f32.mrb[17].mxu0  ;;  %v953_v26 = vpop.f32.mrb[17].mxu1 }
 0x12c   : > { %v826_v27 = vpop.f32.mrb[18].mxu0  ;;  %v954_v28 = vpop.f32.mrb[18].mxu1 }
 0x12d   : > { %v827_v29 = vadd.f32 %v2466_v11, %v826_v27  ;;  %v955_v30 = vadd.f32 %v2466_v11, %v954_v28  ;;  %v828_v31 = vpop.f32.mrb[19].mxu0  ;;  %v956_v32 = vpop.f32.mrb[19].mxu1  ;;  %v1054_v33 = vmax.f32 %v824_v23, 0.0  ;;  %v1086_v34 = vmax.f32 %v952_v24, 0.0 }
 0x12f   : > { %v1055_v35 = vmax.f32 %v827_v29, 0.0  ;;  %v1087_v36 = vmax.f32 %v955_v30, 0.0 }
 0x131   : > { %v1820_v37 = vpack.c.bf16 %v1055_v35, %v1054_v33  ;;  %v1900_v38 = vpack.c.bf16 %v1087_v36, %v1086_v34 }
 0x132   : > { %v831_v39 = vpop.f32.mrb[20].mxu0  ;;  %v959_v40 = vpop.f32.mrb[20].mxu1 }
 0x133   : > { %1960 = vst [vmem:[%s2475_s11 + $0x20] sm:$0xff] %v1820_v37   ;;  %1976 = vst [vmem:[%s2475_s11 + $0xa0] sm:$0xff] %v1900_v38   ;;  %v832_v41 = vadd.f32 %v2466_v11, %v831_v39  ;;  %v960_v42 = vadd.f32 %v2466_v11, %v959_v40  ;;  %v833_v43 = vpop.f32.mrb[21].mxu0  ;;  %v961_v44 = vpop.f32.mrb[21].mxu1 }
 0x134   : > { %v834_v45 = vpop.f32.mrb[22].mxu0  ;;  %v962_v46 = vpop.f32.mrb[22].mxu1 }
 0x135   : > { %v835_v47 = vadd.f32 %v2466_v11, %v834_v45  ;;  %v963_v48 = vadd.f32 %v2466_v11, %v962_v46  ;;  %v836_v49 = vpop.f32.mrb[23].mxu0  ;;  %v964_v50 = vpop.f32.mrb[23].mxu1  ;;  %v1056_v51 = vmax.f32 %v832_v41, 0.0  ;;  %v1088_v52 = vmax.f32 %v960_v42, 0.0 }
 0x137   : > { %v1057_v53 = vmax.f32 %v835_v47, 0.0  ;;  %v1089_v54 = vmax.f32 %v963_v48, 0.0 }
 0x139   : > { %v1825_v55 = vpack.c.bf16 %v1057_v53, %v1056_v51  ;;  %v1905_v56 = vpack.c.bf16 %v1089_v54, %v1088_v52 }
 0x13a   : > { %v839_v57 = vpop.f32.mrb[24].mxu0  ;;  %v967_v58 = vpop.f32.mrb[24].mxu1 }
 0x13b   : > { %1961 = vst [vmem:[%s2475_s11 + $0x28] sm:$0xff] %v1825_v55   ;;  %1977 = vst [vmem:[%s2475_s11 + $0xa8] sm:$0xff] %v1905_v56   ;;  %v840_v59 = vadd.f32 %v2466_v11, %v839_v57  ;;  %v968_v60 = vadd.f32 %v2466_v11, %v967_v58  ;;  %v841_v61 = vpop.f32.mrb[25].mxu0  ;;  %v969_v62 = vpop.f32.mrb[25].mxu1 }
 0x13c   : > { %v842_v63 = vpop.f32.mrb[26].mxu0  ;;  %v970_v0 = vpop.f32.mrb[26].mxu1 }
 0x13d   : > { %v843_v1 = vadd.f32 %v2466_v11, %v842_v63  ;;  %v971_v2 = vadd.f32 %v2466_v11, %v970_v0  ;;  %v844_v3 = vpop.f32.mrb[27].mxu0  ;;  %v972_v4 = vpop.f32.mrb[27].mxu1  ;;  %v1058_v5 = vmax.f32 %v840_v59, 0.0  ;;  %v1090_v6 = vmax.f32 %v968_v60, 0.0 }
 0x13f   : > { %v1059_v7 = vmax.f32 %v843_v1, 0.0  ;;  %v1091_v8 = vmax.f32 %v971_v2, 0.0 }
 0x141   : > { %v1830_v9 = vpack.c.bf16 %v1059_v7, %v1058_v5  ;;  %v1910_v10 = vpack.c.bf16 %v1091_v8, %v1090_v6 }
 0x142   : > { %v847_v12 = vpop.f32.mrb[28].mxu0  ;;  %v975_v13 = vpop.f32.mrb[28].mxu1 }
 0x143   : > { %1962 = vst [vmem:[%s2475_s11 + $0x30] sm:$0xff] %v1830_v9   ;;  %1978 = vst [vmem:[%s2475_s11 + $0xb0] sm:$0xff] %v1910_v10   ;;  %v848_v14 = vadd.f32 %v2466_v11, %v847_v12  ;;  %v976_v15 = vadd.f32 %v2466_v11, %v975_v13  ;;  %v849_v16 = vpop.f32.mrb[29].mxu0  ;;  %v977_v17 = vpop.f32.mrb[29].mxu1 }
 0x144   : > { %v850_v18 = vpop.f32.mrb[30].mxu0  ;;  %v978_v19 = vpop.f32.mrb[30].mxu1 }
 0x145   : > { %v851_v20 = vadd.f32 %v2466_v11, %v850_v18  ;;  %v979_v21 = vadd.f32 %v2466_v11, %v978_v19  ;;  %v852_v22 = vpop.f32.mrb[31].mxu0  ;;  %v980_v23 = vpop.f32.mrb[31].mxu1  ;;  %v1060_v24 = vmax.f32 %v848_v14, 0.0  ;;  %v1092_v25 = vmax.f32 %v976_v15, 0.0 }
 0x147   : > { %v1061_v26 = vmax.f32 %v851_v20, 0.0  ;;  %v1093_v27 = vmax.f32 %v979_v21, 0.0 }
 0x149   : > { %v1835_v28 = vpack.c.bf16 %v1061_v26, %v1060_v24  ;;  %v1915_v29 = vpack.c.bf16 %v1093_v27, %v1092_v25 }
 0x14a   : > { %v855_v30 = vpop.f32.mrb[32].mxu0  ;;  %v983_v31 = vpop.f32.mrb[32].mxu1 }
 0x14b   : > { %1963 = vst [vmem:[%s2475_s11 + $0x38] sm:$0xff] %v1835_v28   ;;  %1979 = vst [vmem:[%s2475_s11 + $0xb8] sm:$0xff] %v1915_v29   ;;  %v856_v32 = vadd.f32 %v2466_v11, %v855_v30  ;;  %v984_v33 = vadd.f32 %v2466_v11, %v983_v31  ;;  %v857_v34 = vpop.f32.mrb[33].mxu0  ;;  %v985_v35 = vpop.f32.mrb[33].mxu1 }
 0x14c   : > { %v858_v36 = vpop.f32.mrb[34].mxu0  ;;  %v986_v37 = vpop.f32.mrb[34].mxu1 }
 0x14d   : > { %v859_v38 = vadd.f32 %v2466_v11, %v858_v36  ;;  %v987_v39 = vadd.f32 %v2466_v11, %v986_v37  ;;  %v860_v40 = vpop.f32.mrb[35].mxu0  ;;  %v988_v41 = vpop.f32.mrb[35].mxu1  ;;  %v1062_v42 = vmax.f32 %v856_v32, 0.0  ;;  %v1094_v43 = vmax.f32 %v984_v33, 0.0 }
 0x14f   : > { %v1063_v44 = vmax.f32 %v859_v38, 0.0  ;;  %v1095_v45 = vmax.f32 %v987_v39, 0.0 }
 0x151   : > { %v1840_v46 = vpack.c.bf16 %v1063_v44, %v1062_v42  ;;  %v1920_v47 = vpack.c.bf16 %v1095_v45, %v1094_v43 }
 0x152   : > { %v863_v48 = vpop.f32.mrb[36].mxu0  ;;  %v991_v49 = vpop.f32.mrb[36].mxu1 }
 0x153   : > { %1964 = vst [vmem:[%s2475_s11 + $0x40] sm:$0xff] %v1840_v46   ;;  %1980 = vst [vmem:[%s2475_s11 + $0xc0] sm:$0xff] %v1920_v47   ;;  %v864_v50 = vadd.f32 %v2466_v11, %v863_v48  ;;  %v992_v51 = vadd.f32 %v2466_v11, %v991_v49  ;;  %v865_v52 = vpop.f32.mrb[37].mxu0  ;;  %v993_v53 = vpop.f32.mrb[37].mxu1 }
 0x154   : > { %v866_v54 = vpop.f32.mrb[38].mxu0  ;;  %v994_v55 = vpop.f32.mrb[38].mxu1 }
 0x155   : > { %v867_v56 = vadd.f32 %v2466_v11, %v866_v54  ;;  %v995_v57 = vadd.f32 %v2466_v11, %v994_v55  ;;  %v868_v58 = vpop.f32.mrb[39].mxu0  ;;  %v996_v59 = vpop.f32.mrb[39].mxu1  ;;  %v1064_v60 = vmax.f32 %v864_v50, 0.0  ;;  %v1096_v61 = vmax.f32 %v992_v51, 0.0 }
 0x157   : > { %v1065_v62 = vmax.f32 %v867_v56, 0.0  ;;  %v1097_v63 = vmax.f32 %v995_v57, 0.0 }
 0x159   : > { %v1845_v0 = vpack.c.bf16 %v1065_v62, %v1064_v60  ;;  %v1925_v1 = vpack.c.bf16 %v1097_v63, %v1096_v61 }
 0x15a   : > { %v871_v2 = vpop.f32.mrb[40].mxu0  ;;  %v999_v3 = vpop.f32.mrb[40].mxu1 }
 0x15b   : > { %1965 = vst [vmem:[%s2475_s11 + $0x48] sm:$0xff] %v1845_v0   ;;  %1981 = vst [vmem:[%s2475_s11 + $0xc8] sm:$0xff] %v1925_v1   ;;  %v872_v4 = vadd.f32 %v2466_v11, %v871_v2  ;;  %v1000_v5 = vadd.f32 %v2466_v11, %v999_v3  ;;  %v873_v6 = vpop.f32.mrb[41].mxu0  ;;  %v1001_v7 = vpop.f32.mrb[41].mxu1 }
 0x15c   : > { %v874_v8 = vpop.f32.mrb[42].mxu0  ;;  %v1002_v9 = vpop.f32.mrb[42].mxu1 }
 0x15d   : > { %v875_v10 = vadd.f32 %v2466_v11, %v874_v8  ;;  %v1003_v12 = vadd.f32 %v2466_v11, %v1002_v9  ;;  %v876_v13 = vpop.f32.mrb[43].mxu0  ;;  %v1004_v14 = vpop.f32.mrb[43].mxu1  ;;  %v1066_v15 = vmax.f32 %v872_v4, 0.0  ;;  %v1098_v16 = vmax.f32 %v1000_v5, 0.0 }
 0x15f   : > { %v1067_v17 = vmax.f32 %v875_v10, 0.0  ;;  %v1099_v18 = vmax.f32 %v1003_v12, 0.0 }
 0x161   : > { %v1850_v19 = vpack.c.bf16 %v1067_v17, %v1066_v15  ;;  %v1930_v20 = vpack.c.bf16 %v1099_v18, %v1098_v16 }
 0x162   : > { %v879_v21 = vpop.f32.mrb[44].mxu0  ;;  %v1007_v22 = vpop.f32.mrb[44].mxu1 }
 0x163   : > { %1966 = vst [vmem:[%s2475_s11 + $0x50] sm:$0xff] %v1850_v19   ;;  %1982 = vst [vmem:[%s2475_s11 + $0xd0] sm:$0xff] %v1930_v20   ;;  %v880_v23 = vadd.f32 %v2466_v11, %v879_v21  ;;  %v1008_v24 = vadd.f32 %v2466_v11, %v1007_v22  ;;  %v881_v25 = vpop.f32.mrb[45].mxu0  ;;  %v1009_v26 = vpop.f32.mrb[45].mxu1 }
 0x164   : > { %v882_v27 = vpop.f32.mrb[46].mxu0  ;;  %v1010_v28 = vpop.f32.mrb[46].mxu1 }
 0x165   : > { %v883_v29 = vadd.f32 %v2466_v11, %v882_v27  ;;  %v1011_v30 = vadd.f32 %v2466_v11, %v1010_v28  ;;  %v884_v31 = vpop.f32.mrb[47].mxu0  ;;  %v1012_v32 = vpop.f32.mrb[47].mxu1  ;;  %v1068_v33 = vmax.f32 %v880_v23, 0.0  ;;  %v1100_v34 = vmax.f32 %v1008_v24, 0.0 }
 0x167   : > { %v1069_v35 = vmax.f32 %v883_v29, 0.0  ;;  %v1101_v36 = vmax.f32 %v1011_v30, 0.0 }
 0x169   : > { %v1855_v37 = vpack.c.bf16 %v1069_v35, %v1068_v33  ;;  %v1935_v38 = vpack.c.bf16 %v1101_v36, %v1100_v34 }
 0x16a   : > { %v887_v39 = vpop.f32.mrb[48].mxu0  ;;  %v1015_v40 = vpop.f32.mrb[48].mxu1 }
 0x16b   : > { %1967 = vst [vmem:[%s2475_s11 + $0x58] sm:$0xff] %v1855_v37   ;;  %1983 = vst [vmem:[%s2475_s11 + $0xd8] sm:$0xff] %v1935_v38   ;;  %v888_v41 = vadd.f32 %v2466_v11, %v887_v39  ;;  %v1016_v42 = vadd.f32 %v2466_v11, %v1015_v40  ;;  %v889_v43 = vpop.f32.mrb[49].mxu0  ;;  %v1017_v44 = vpop.f32.mrb[49].mxu1 }
 0x16c   : > { %v890_v45 = vpop.f32.mrb[50].mxu0  ;;  %v1018_v46 = vpop.f32.mrb[50].mxu1 }
 0x16d   : > { %v891_v47 = vadd.f32 %v2466_v11, %v890_v45  ;;  %v1019_v48 = vadd.f32 %v2466_v11, %v1018_v46  ;;  %v892_v49 = vpop.f32.mrb[51].mxu0  ;;  %v1020_v50 = vpop.f32.mrb[51].mxu1  ;;  %v1070_v51 = vmax.f32 %v888_v41, 0.0  ;;  %v1102_v52 = vmax.f32 %v1016_v42, 0.0 }
 0x16f   : > { %v1071_v53 = vmax.f32 %v891_v47, 0.0  ;;  %v1103_v54 = vmax.f32 %v1019_v48, 0.0 }
 0x171   : > { %v1860_v55 = vpack.c.bf16 %v1071_v53, %v1070_v51  ;;  %v1940_v56 = vpack.c.bf16 %v1103_v54, %v1102_v52 }
 0x172   : > { %v895_v57 = vpop.f32.mrb[52].mxu0  ;;  %v1023_v58 = vpop.f32.mrb[52].mxu1 }
 0x173   : > { %1968 = vst [vmem:[%s2475_s11 + $0x60] sm:$0xff] %v1860_v55   ;;  %1984 = vst [vmem:[%s2475_s11 + $0xe0] sm:$0xff] %v1940_v56   ;;  %v896_v59 = vadd.f32 %v2466_v11, %v895_v57  ;;  %v1024_v60 = vadd.f32 %v2466_v11, %v1023_v58  ;;  %v897_v61 = vpop.f32.mrb[53].mxu0  ;;  %v1025_v62 = vpop.f32.mrb[53].mxu1 }
 0x174   : > { %v898_v63 = vpop.f32.mrb[54].mxu0  ;;  %v1026_v0 = vpop.f32.mrb[54].mxu1 }
 0x175   : > { %v899_v1 = vadd.f32 %v2466_v11, %v898_v63  ;;  %v1027_v2 = vadd.f32 %v2466_v11, %v1026_v0  ;;  %v900_v3 = vpop.f32.mrb[55].mxu0  ;;  %v1028_v4 = vpop.f32.mrb[55].mxu1  ;;  %v1072_v5 = vmax.f32 %v896_v59, 0.0  ;;  %v1104_v6 = vmax.f32 %v1024_v60, 0.0 }
 0x177   : > { %v1073_v7 = vmax.f32 %v899_v1, 0.0  ;;  %v1105_v8 = vmax.f32 %v1027_v2, 0.0 }
 0x179   : > { %v1865_v9 = vpack.c.bf16 %v1073_v7, %v1072_v5  ;;  %v1945_v10 = vpack.c.bf16 %v1105_v8, %v1104_v6 }
 0x17a   : > { %v903_v12 = vpop.f32.mrb[56].mxu0  ;;  %v1031_v13 = vpop.f32.mrb[56].mxu1 }
 0x17b   : > { %1969 = vst [vmem:[%s2475_s11 + $0x68] sm:$0xff] %v1865_v9   ;;  %1985 = vst [vmem:[%s2475_s11 + $0xe8] sm:$0xff] %v1945_v10   ;;  %v904_v14 = vadd.f32 %v2466_v11, %v903_v12  ;;  %v1032_v15 = vadd.f32 %v2466_v11, %v1031_v13  ;;  %v905_v16 = vpop.f32.mrb[57].mxu0  ;;  %v1033_v17 = vpop.f32.mrb[57].mxu1 }
 0x17c   : > { %v906_v18 = vpop.f32.mrb[58].mxu0  ;;  %v1034_v19 = vpop.f32.mrb[58].mxu1 }
 0x17d   : > { %v907_v20 = vadd.f32 %v2466_v11, %v906_v18  ;;  %v1035_v21 = vadd.f32 %v2466_v11, %v1034_v19  ;;  %v908_v22 = vpop.f32.mrb[59].mxu0  ;;  %v1036_v23 = vpop.f32.mrb[59].mxu1  ;;  %v1074_v24 = vmax.f32 %v904_v14, 0.0  ;;  %v1106_v25 = vmax.f32 %v1032_v15, 0.0 }
 0x17f   : > { %v1075_v26 = vmax.f32 %v907_v20, 0.0  ;;  %v1107_v27 = vmax.f32 %v1035_v21, 0.0 }
 0x181   : > { %v1870_v28 = vpack.c.bf16 %v1075_v26, %v1074_v24  ;;  %v1950_v29 = vpack.c.bf16 %v1107_v27, %v1106_v25 }
 0x182   : > { %v911_v30 = vpop.f32.mrb[60].mxu0  ;;  %v1039_v31 = vpop.f32.mrb[60].mxu1 }
 0x183   : > { %1970 = vst [vmem:[%s2475_s11 + $0x70] sm:$0xff] %v1870_v28   ;;  %1986 = vst [vmem:[%s2475_s11 + $0xf0] sm:$0xff] %v1950_v29   ;;  %v912_v32 = vadd.f32 %v2466_v11, %v911_v30  ;;  %v1040_v33 = vadd.f32 %v2466_v11, %v1039_v31  ;;  %v913_v34 = vpop.f32.mrb[61].mxu0  ;;  %v1041_v35 = vpop.f32.mrb[61].mxu1 }
 0x184   : > { %v914_v36 = vpop.f32.mrb[62].mxu0  ;;  %v1042_v37 = vpop.f32.mrb[62].mxu1 }
 0x185   : > { %v915_v38 = vadd.f32 %v2466_v11, %v914_v36  ;;  %v1043_v39 = vadd.f32 %v2466_v11, %v1042_v37  ;;  %v916_v40 = vpop.f32.mrb[63].mxu0  ;;  %v1044_v41 = vpop.f32.mrb[63].mxu1  ;;  %v1076_v42 = vmax.f32 %v912_v32, 0.0  ;;  %v1108_v43 = vmax.f32 %v1040_v33, 0.0 }
 0x187   : > { %v1077_v44 = vmax.f32 %v915_v38, 0.0  ;;  %v1109_v45 = vmax.f32 %v1043_v39, 0.0 }
 0x189   : > { %v1875_v11 = vpack.c.bf16 %v1077_v44, %v1076_v42  ;;  %v1955_v46 = vpack.c.bf16 %v1109_v45, %v1108_v43 }
 0x18b   : > { %1971 = vst [vmem:[%s2475_s11 + $0x78] sm:$0xff] %v1875_v11   ;;  %1987 = vst [vmem:[%s2475_s11 + $0xf8] sm:$0xff] %v1955_v46  }
 0x18c   : > { %2185 = shalt.err (!%p2182_p5)
}
 0x18d   : > { %s2186_s4 = scalar_lea.hbm %s2572_s26, 4096  ;;  %s2190_s7 = scalar_lea.hbm %s2629_s3, 16384 }
 0x18e   : > { %p2187_p6 = scmp.ne.s32.totalorder %s2572_s26, %s2186_s4  ;;  %p2191_p10 = scmp.lt.u32.totalorder %s2572_s26, %s2629_s3 }
 0x18f   : > { %p2192_p11 = scmp.lt.u32.totalorder %s2190_s7, %s2186_s4  ;;  %p2194_p13 = scmp.lt.u32.totalorder %s2186_s4, %s2572_s26 }
 0x190   : > { %p2188_p7 = pnand %p2187_p6, %p2316_p4 }
 0x191   : > { %p2193_p12 = por %p2192_p11, %p2191_p10 }
 0x192   : > { %p2189_p9 = pneg %p2188_p7 }
 0x193   : > { %p2195_p0 = por %p2194_p13, %p2193_p12 }
 0x195   : > { %p2196_p1 = pnand %p2195_p0, %p2189_p9 }
 0x197   : > { %2199 = shalt.err (!%p2196_p1)
}
 0x198   : > { %s2254_s9 = smov 64   ;;  %s2255_s11 = smov 4  }
 0x199   : > { %2008 = dma.vmem_to_hbm [thread:$0]  (%p2316_p4), %s2574_s19, 4096, %s2572_s26, %s2580_s15, %s2254_s9, %s2254_s9, %s2255_s11  }
 0x19a PF: > { %p2014_p2 = scmp.ge.s32.totalorder %s2250_s17, 2  ;;  %s1460_s18 = sand.u32 1, %s2230_s12  }
 0x19b   : > { %s1461_s21 = scalar_lea.sflag [#allocation3], %s1460_s18 }
 0x19c   : > { %p2011_p3 = pnand %p2014_p2, %p2323_p8 }
 0x19e   : > { %2225 = dma.done.wait (!%p2011_p3), %s1461_s21, 4096  }
 0x19f   : > { %2227 = vsyncadd (!%p2011_p3), %s1461_s21, 4294963200  ;;  %s16_s17 = sadd.s32 1, %s2250_s17   ;;  %s2632_s12 = smov %s2234_s13 }
 0x1a0   : > { %p13_p5 = scmp.ge.s32.totalorder %s16_s17, 6   ;;  %s2633_s13 = smov %s2238_s14 }
 0x1a1   : > { %s2634_s14 = smov %s2329_s25  ;;  %s2635_s15 = smov %s2246_s16 }
 0x1a2   : > { %s2636_s16 = smov %s2638_s20  ;;  %15 = sbr.rel (!%p13_p5) target bundleno = 4 (0x4), region = 73 }
 0x1a9   :  { %1466 = vsyncpa [#allocation3], 1 }
 0x1aa   :  { %1468 = vsyncpa [#allocation3 + $0x1], 1 }

</bundles_post_ra>
